<compile_context>
chip_gen: v5e
topology: v5e:2x2
jax: 0.10.0
libtpu: 0.0.40
codegen_flags: <defaults>
</compile_context>

<pallas_src>
import jax
import jax.numpy as jnp
from jax.experimental import pallas as pl
from jax.experimental.pallas import tpu as pltpu

LANE = 128
_MIB = 1024 * 1024


def _round_up(x, m):
    return ((x + m - 1) // m) * m


def _sublane_for(dtype):
    # Rows per vreg tile: f32 -> 8, bf16 -> 16, int8/fp8 -> 32.
    return {4: 8, 2: 16, 1: 32}[jnp.dtype(dtype).itemsize]


def _vmem_capacity_bytes():
    try:
        return int(pltpu.get_tpu_info().vmem_capacity_bytes)
    except Exception:
        return 64 * _MIB  # conservative fallback: v7x per-TensorCore VMEM


# ---------------------------------------------------------------------------
# Kernels
# ---------------------------------------------------------------------------

def _mlp_fused_kernel(x_ref, w1_ref, b1_ref, w2_ref, b2_ref, o_ref):
    # fc1 + ReLU: MXU accumulates in f32, elementwise stays f32.
    h = jnp.dot(x_ref[...], w1_ref[...], preferred_element_type=jnp.float32)
    h = jnp.maximum(h + b1_ref[...], 0.0)                 # (tb, Hp) + (1, Hp)
    # fc2 + ReLU.  Cast the intermediate to the weight dtype for the MXU
    # (no-op for f32; deliberate bf16 round trip on the bf16 path).
    o = jnp.dot(h.astype(w2_ref.dtype), w2_ref[...],
                preferred_element_type=jnp.float32)
    o_ref[...] = jnp.maximum(o + b2_ref[...], 0.0).astype(o_ref.dtype)


def _mlp_hchunk_kernel(x_ref, w1_ref, b1_ref, w2_ref, b2_ref, o_ref, acc_ref):
    # Hidden dim chunked along grid axis 1 ("arbitrary"):
    #   acc += relu(x @ w1[:, k] + b1[k]) @ w2[k, :]
    k = pl.program_id(1)

    @pl.when(k == 0)
    def _():
        acc_ref[...] = jnp.zeros_like(acc_ref)

    h = jnp.dot(x_ref[...], w1_ref[...], preferred_element_type=jnp.float32)
    h = jnp.maximum(h + b1_ref[...], 0.0)                 # (tb, hk)
    acc_ref[...] += jnp.dot(h.astype(w2_ref.dtype), w2_ref[...],
                            preferred_element_type=jnp.float32)

    @pl.when(k == pl.num_programs(1) - 1)
    def _():
        o_ref[...] = jnp.maximum(acc_ref[...] + b2_ref[...],
                                 0.0).astype(o_ref.dtype)


# ---------------------------------------------------------------------------
# Wrapper
# ---------------------------------------------------------------------------

def prepare_mlp_params(w1, b1, w2, b2, *, compute_dtype=jnp.float32):
    """Pad MLP parameters to lane-dense shapes ONCE (call at init time).

    w1: (D_in, H), b1: (H,) or (1, H), w2: (H, D_out), b2: (D_out,) or (1, D_out).
    Zero padding is mathematically exact: padded input features hit zero
    weight rows; padded hidden/output units have zero weights and zero bias.
    """
    compute_dtype = jnp.dtype(compute_dtype)
    D_in, H = w1.shape
    D_out = w2.shape[-1]
    D_in_p, H_p, D_out_p = (_round_up(d, LANE) for d in (D_in, H, D_out))

    def _pad2(a, shape, dtype):
        a2 = jnp.asarray(a, dtype)
        a2 = a2.reshape((-1, a2.shape[-1]))
        if a2.shape == tuple(shape):
            return a2
        return jnp.zeros(shape, dtype).at[:a2.shape[0], :a2.shape[1]].set(a2)

    return dict(
        w1=_pad2(w1, (D_in_p, H_p), compute_dtype),
        b1=_pad2(b1, (1, H_p), jnp.float32),
        w2=_pad2(w2, (H_p, D_out_p), compute_dtype),
        b2=_pad2(b2, (1, D_out_p), jnp.float32),
        dims=(D_in, H, D_out),
        compute_dtype=compute_dtype,
    )


def mlp_forward(x, params, *, tb=None, h_chunk=None):
    """relu(relu(x @ w1 + b1) @ w2 + b2).  x: (B, D_in); params from
    prepare_mlp_params.  `h_chunk` forces the hidden-chunked accumulator path
    (otherwise chosen automatically when resident weights exceed VMEM)."""
    D_in, H, D_out = params["dims"]
    compute_dtype = params["compute_dtype"]
    w1p, b1p, w2p, b2p = params["w1"], params["b1"], params["w2"], params["b2"]
    D_in_p, H_p = w1p.shape
    D_out_p = w2p.shape[1]

    B = x.shape[0]
    out_dtype = x.dtype
    cd = compute_dtype.itemsize
    od = jnp.dtype(out_dtype).itemsize
    sub = _sublane_for(compute_dtype)

    # ---- batch tile --------------------------------------------------------
    if tb is None:
        B_al = _round_up(B, sub)
        if B_al <= 512:
            tb = B_al  # one grid step: splitting small batches is pure overhead
        else:
            # Large tiles (>=256 rows), pick the candidate wasting fewest
            # padded rows; ties prefer the larger tile.
            candidates = [_round_up(c, sub) for c in (512, 448, 384, 320, 256)]
            tb = min(candidates, key=lambda c: (_round_up(B_al, c) - B_al, -c))
    tb = max(sub, _round_up(tb, sub))
    B_p = _round_up(B, tb)
    grid_b = B_p // tb

    # ---- activation padding (parameters were padded once at init) ----------
    xp = x.astype(compute_dtype)
    if xp.shape != (B_p, D_in_p):
        xp = jnp.zeros((B_p, D_in_p), compute_dtype).at[:B, :D_in].set(xp)

    # ---- VMEM budget / path selection ---------------------------------------
    vmem_cap = _vmem_capacity_bytes()
    headroom = 4 * _MIB
    nbuf_x = 1 if grid_b == 1 else 2
    weight_bytes = (D_in_p * H_p + H_p * D_out_p) * cd
    needed_fused = (
        weight_bytes                                   # resident weights (x1)
        + (H_p + D_out_p) * 4                          # resident biases (x1)
        + nbuf_x * tb * D_in_p * cd                    # x tile
        + 2 * tb * D_out_p * od                        # out tile
        + tb * H_p * 4                                 # (tb, Hp) f32 intermed.
    )

    def _chunk_needed(hk_):
        return (
            2 * (D_in_p * hk_ + hk_ * D_out_p) * cd    # dbl-buffered W chunks
            + 2 * hk_ * 4 + 2 * D_out_p * 4            # bias tiles
            + nbuf_x * tb * D_in_p * cd                # x tile
            + 2 * tb * D_out_p * od                    # out tile
            + tb * hk_ * 4                             # (tb, hk) f32 intermed.
            + tb * D_out_p * 4                         # f32 accumulator
        )

    use_chunked = (h_chunk is not None
                   or needed_fused + headroom > vmem_cap)

    if not use_chunked:
        vmem_limit = int(min(vmem_cap, max(needed_fused + headroom, 16 * _MIB)))
        if grid_b == 1:
            # Nothing to pipeline: single-buffer the x tile too.
            x_spec = pl.BlockSpec((tb, D_in_p), lambda i: (i, 0),
                                  pipeline_mode=pl.Buffered(1))
        else:
            x_spec = pl.BlockSpec((tb, D_in_p), lambda i: (i, 0))
        out_p = pl.pallas_call(
            _mlp_fused_kernel,
            out_shape=jax.ShapeDtypeStruct((B_p, D_out_p), out_dtype),
            grid_spec=pltpu.PrefetchScalarGridSpec(
                num_scalar_prefetch=0,
                grid=(grid_b,),
                in_specs=[
                    x_spec,
                    # Weights / biases are grid-invariant -> single-buffered.
                    pl.BlockSpec((D_in_p, H_p), lambda i: (0, 0),
                                 pipeline_mode=pl.Buffered(1)),
                    pl.BlockSpec((1, H_p), lambda i: (0, 0),
                                 pipeline_mode=pl.Buffered(1)),
                    pl.BlockSpec((H_p, D_out_p), lambda i: (0, 0),
                                 pipeline_mode=pl.Buffered(1)),
                    pl.BlockSpec((1, D_out_p), lambda i: (0, 0),
                                 pipeline_mode=pl.Buffered(1)),
                ],
                out_specs=pl.BlockSpec((tb, D_out_p), lambda i: (i, 0)),
            ),
            compiler_params=pltpu.CompilerParams(
                dimension_semantics=("parallel",),
                vmem_limit_bytes=vmem_limit,
            ),
        )(xp, w1p, b1p, w2p, b2p)
    else:
        # Largest hk (multiple of 128 dividing H_p) whose per-step working set
        # fits the budget; honour an explicit h_chunk request.
        hk_candidates = [LANE * d for d in range(H_p // LANE, 0, -1)
                         if (H_p // LANE) % d == 0]
        if h_chunk is not None:
            target = max(LANE, _round_up(h_chunk, LANE))
            hk = next((c for c in hk_candidates if c <= target), LANE)
        else:
            hk = next((c for c in hk_candidates
                       if _chunk_needed(c) + headroom <= vmem_cap), LANE)
        n_chunks = H_p // hk
        vmem_limit = int(min(vmem_cap,
                             max(_chunk_needed(hk) + headroom, 16 * _MIB)))
        out_p = pl.pallas_call(
            _mlp_hchunk_kernel,
            out_shape=jax.ShapeDtypeStruct((B_p, D_out_p), out_dtype),
            grid_spec=pltpu.PrefetchScalarGridSpec(
                num_scalar_prefetch=0,
                grid=(grid_b, n_chunks),
                in_specs=[
                    pl.BlockSpec((tb, D_in_p), lambda i, k: (i, 0)),
                    pl.BlockSpec((D_in_p, hk), lambda i, k: (0, k)),
                    pl.BlockSpec((1, hk), lambda i, k: (0, k)),
                    pl.BlockSpec((hk, D_out_p), lambda i, k: (k, 0)),
                    pl.BlockSpec((1, D_out_p), lambda i, k: (0, 0)),
                ],
                out_specs=pl.BlockSpec((tb, D_out_p), lambda i, k: (i, 0)),
                scratch_shapes=[pltpu.VMEM((tb, D_out_p), jnp.float32)],
            ),
            compiler_params=pltpu.CompilerParams(
                dimension_semantics=("parallel", "arbitrary"),
                vmem_limit_bytes=vmem_limit,
            ),
        )(xp, w1p, b1p, w2p, b2p)

    return out_p[:B, :D_out]


def _xavier_uniform(key, fan_in, fan_out, dtype=jnp.float32):
    limit = jnp.sqrt(6.0 / (fan_in + fan_out))
    return jax.random.uniform(key, (fan_in, fan_out), dtype,
                              minval=-limit, maxval=limit)


if __name__ == "__main__":
    # Small shapes consistent with MLP(input_size, output_size, hidden_size).
    batch, input_size, hidden_size, output_size = 64, 32, 64, 16

    key = jax.random.PRNGKey(0)
    k_x, k_w1, k_b1, k_w2, k_b2 = jax.random.split(key, 5)

    x = jax.random.normal(k_x, (batch, input_size), jnp.float32)
    w1 = _xavier_uniform(k_w1, input_size, hidden_size)
    b1 = jax.random.uniform(k_b1, (hidden_size,), jnp.float32,
                            minval=-0.1, maxval=0.1)
    w2 = _xavier_uniform(k_w2, hidden_size, output_size)
    b2 = jax.random.uniform(k_b2, (output_size,), jnp.float32,
                            minval=-0.1, maxval=0.1)

    # Pure-JAX reference.
    ref = jnp.maximum(jnp.maximum(x @ w1 + b1, 0.0) @ w2 + b2, 0.0)

    # 1) f32 fused path: default tiling -> single grid step (tb = 64).
    params_f32 = prepare_mlp_params(w1, b1, w2, b2, compute_dtype=jnp.float32)
    out = jax.block_until_ready(mlp_forward(x, params_f32))
    assert out.shape == (batch, output_size)
    assert jnp.allclose(out, ref, atol=1e-5, rtol=1e-5)

    # 2) bf16-MXU path (f32 accumulation + f32 elementwise); x is quantized to
    #    bf16 in the wrapper, hence the loose tolerance.
    params_bf16 = prepare_mlp_params(w1, b1, w2, b2, compute_dtype=jnp.bfloat16)
    out_bf16 = jax.block_until_ready(mlp_forward(x, params_bf16))
    assert out_bf16.shape == (batch, output_size)
    assert jnp.allclose(out_bf16, ref, atol=1e-1, rtol=1e-1)

    # 3) H-chunked accumulator path (auto-selected when resident weights would
    #    not fit VMEM); exercised here at small scale via h_chunk=128.
    hidden_big = 256
    kw1b, kw2b = jax.random.split(k_w1)
    w1b = _xavier_uniform(kw1b, input_size, hidden_big)
    b1b = jnp.zeros((hidden_big,), jnp.float32)
    w2b = _xavier_uniform(kw2b, hidden_big, output_size)
    ref_b = jnp.maximum(jnp.maximum(x @ w1b + b1b, 0.0) @ w2b + b2, 0.0)
    params_b = prepare_mlp_params(w1b, b1b, w2b, b2, compute_dtype=jnp.float32)
    out_b = jax.block_until_ready(mlp_forward(x, params_b, h_chunk=128))
    assert out_b.shape == (batch, output_size)
    assert jnp.allclose(out_b, ref_b, atol=1e-4, rtol=1e-4)

    print("KERNEL_OK")
</pallas_src>

<mosaic_0001>
module attributes {stable_mosaic.version = 11 : i64} {
  func.func @_mlp_fused_kernel(%arg0: i32, %arg1: memref<64x128xf32, #tpu.memory_space<vmem>>, %arg2: memref<128x128xf32, #tpu.memory_space<vmem>>, %arg3: memref<1x128xf32, #tpu.memory_space<vmem>>, %arg4: memref<128x128xf32, #tpu.memory_space<vmem>>, %arg5: memref<1x128xf32, #tpu.memory_space<vmem>>, %arg6: memref<64x128xf32, #tpu.memory_space<vmem>>) attributes {dimension_semantics = [#tpu.dimension_semantics<parallel>], iteration_bounds = array<i64: 1>, scalar_prefetch = 0 : i64, scratch_operands = 0 : i64, tpu.core_type = #tpu.core_type<tc>, window_params = [{pipeline_mode = #tpu.pipeline_mode<synchronous>, transform_indices = @transform_0, window_bounds = array<i64: 64, 128>}, {pipeline_mode = #tpu.pipeline_mode<synchronous>, transform_indices = @transform_1, window_bounds = array<i64: 128, 128>}, {pipeline_mode = #tpu.pipeline_mode<synchronous>, transform_indices = @transform_2, window_bounds = array<i64: 1, 128>}, {pipeline_mode = #tpu.pipeline_mode<synchronous>, transform_indices = @transform_3, window_bounds = array<i64: 128, 128>}, {pipeline_mode = #tpu.pipeline_mode<synchronous>, transform_indices = @transform_4, window_bounds = array<i64: 1, 128>}, {transform_indices = @transform_5, window_bounds = array<i64: 64, 128>}]} {
    %c0 = arith.constant 0 : index
    %c0_0 = arith.constant 0 : index
    %0 = vector.load %arg1[%c0, %c0_0] : memref<64x128xf32, #tpu.memory_space<vmem>>, vector<64x128xf32>
    %c0_1 = arith.constant 0 : index
    %c0_2 = arith.constant 0 : index
    %1 = vector.load %arg2[%c0_1, %c0_2] : memref<128x128xf32, #tpu.memory_space<vmem>>, vector<128x128xf32>
    %cst = arith.constant dense<0.000000e+00> : vector<64x128xf32>
    %2 = tpu.matmul %0, %1, %cst {dimension_numbers = #tpu.dot_dimension_numbers<[1], [0], [0], [1], [0, 0, 1, 1], [], []>} : vector<64x128xf32>, vector<128x128xf32>, vector<64x128xf32> -> vector<64x128xf32>
    %c0_3 = arith.constant 0 : index
    %c0_4 = arith.constant 0 : index
    %3 = vector.load %arg3[%c0_3, %c0_4] : memref<1x128xf32, #tpu.memory_space<vmem>>, vector<1x128xf32>
    %4 = vector.broadcast %3 : vector<1x128xf32> to vector<64x128xf32>
    %5 = arith.addf %2, %4 : vector<64x128xf32>
    %cst_5 = arith.constant 0.000000e+00 : f32
    %6 = vector.broadcast %cst_5 : f32 to vector<64x128xf32>
    %7 = arith.maximumf %5, %6 : vector<64x128xf32>
    %c0_6 = arith.constant 0 : index
    %c0_7 = arith.constant 0 : index
    %8 = vector.load %arg4[%c0_6, %c0_7] : memref<128x128xf32, #tpu.memory_space<vmem>>, vector<128x128xf32>
    %cst_8 = arith.constant dense<0.000000e+00> : vector<64x128xf32>
    %9 = tpu.matmul %7, %8, %cst_8 {dimension_numbers = #tpu.dot_dimension_numbers<[1], [0], [0], [1], [0, 0, 1, 1], [], []>} : vector<64x128xf32>, vector<128x128xf32>, vector<64x128xf32> -> vector<64x128xf32>
    %c0_9 = arith.constant 0 : index
    %c0_10 = arith.constant 0 : index
    %10 = vector.load %arg5[%c0_9, %c0_10] : memref<1x128xf32, #tpu.memory_space<vmem>>, vector<1x128xf32>
    %11 = vector.broadcast %10 : vector<1x128xf32> to vector<64x128xf32>
    %12 = arith.addf %9, %11 : vector<64x128xf32>
    %cst_11 = arith.constant 0.000000e+00 : f32
    %13 = vector.broadcast %cst_11 : f32 to vector<64x128xf32>
    %14 = arith.maximumf %12, %13 : vector<64x128xf32>
    %c0_12 = arith.constant 0 : index
    %c0_13 = arith.constant 0 : index
    %15 = vector.load %arg6[%c0_12, %c0_13] : memref<64x128xf32, #tpu.memory_space<vmem>>, vector<64x128xf32>
    tpu.vector_store %arg6[%c0_12, %c0_13], %14 {strides = array<i32>} : memref<64x128xf32, #tpu.memory_space<vmem>>, vector<64x128xf32>,
    return
  }
  func.func @transform_0(%arg0: i32) -> (i32, i32) {
    %c0_i32 = arith.constant 0 : i32
    %c0_i32_0 = arith.constant 0 : i32
    return %arg0, %c0_i32 : i32, i32
  }
  func.func @transform_1(%arg0: i32) -> (i32, i32) {
    %c0_i32 = arith.constant 0 : i32
    %c0_i32_0 = arith.constant 0 : i32
    %c0_i32_1 = arith.constant 0 : i32
    return %c0_i32, %c0_i32_0 : i32, i32
  }
  func.func @transform_2(%arg0: i32) -> (i32, i32) {
    %c0_i32 = arith.constant 0 : i32
    %c0_i32_0 = arith.constant 0 : i32
    %c0_i32_1 = arith.constant 0 : i32
    return %c0_i32, %c0_i32_0 : i32, i32
  }
  func.func @transform_3(%arg0: i32) -> (i32, i32) {
    %c0_i32 = arith.constant 0 : i32
    %c0_i32_0 = arith.constant 0 : i32
    %c0_i32_1 = arith.constant 0 : i32
    return %c0_i32, %c0_i32_0 : i32, i32
  }
  func.func @transform_4(%arg0: i32) -> (i32, i32) {
    %c0_i32 = arith.constant 0 : i32
    %c0_i32_0 = arith.constant 0 : i32
    %c0_i32_1 = arith.constant 0 : i32
    return %c0_i32, %c0_i32_0 : i32, i32
  }
  func.func @transform_5(%arg0: i32) -> (i32, i32) {
    %c0_i32 = arith.constant 0 : i32
    %c0_i32_0 = arith.constant 0 : i32
    return %arg0, %c0_i32 : i32, i32
  }
}

</mosaic_0001>

<bundles_post_ra>
// kernel: tpu_custom_call.1
= control target key start
LH: loop header
LB: loop body
LE: loop exit
PB: predicated region body
PF: predicated region fallthrough
CT: control target
= control target key end

     0   :  { %10 = vsyncpa [#allocation3], 0  ;;  %s450_s0 = inlined_call_operand.hbm [shape: f32[64,128], index: 0, kind: input, shape index: {}]   ;;  %s451_s1 = inlined_call_operand.hbm [shape: f32[128,128], index: 1, kind: input, shape index: {}]   ;;  %s452_s2 = inlined_call_operand.vmem [shape: f32[1,128], index: 2, kind: input, shape index: {}]   ;;  %s453_s3 = inlined_call_operand.hbm [shape: f32[128,128], index: 3, kind: input, shape index: {}]   ;;  %s454_s4 = inlined_call_operand.vmem [shape: f32[1,128], index: 4, kind: input, shape index: {}]   ;;  %s455_s5 = inlined_call_operand.hbm [shape: f32[64,128], index: 5, kind: output, shape index: {}]  }
   0x1   :  { %11 = vsyncpa [#allocation6], 0 }
   0x2   :  { %12 = vsyncpa [#allocation4], 0  ;;  %s30_s20 = sshll.u32 %s451_s1, 4  ;;  %s384_s21 = smov [#allocation5]   ;;  %s31_s20 = int_to_ptr.hbm [resolvable:$true] %s30_s20 }
   0x3   :  { %s32_s22 = sshll.u32 %s384_s21, 4  ;;  %s17_s25 = sshll.u32 %s450_s0, 4  ;;  %s33_s22 = int_to_ptr.vmem [resolvable:$true] %s32_s22  ;;  %s18_s25 = int_to_ptr.hbm [resolvable:$true] %s17_s25 }
   0x4   :  { %s385_s26 = smov 128   ;;  %s386_s27 = smov 8  }
   0x5   :  { %38 = dma.hbm_to_vmem [thread:$0]  %s31_s20, 2048, %s33_s22, [#allocation6], %s385_s26, %s385_s26, %s386_s27  }
   0x6   :  { %s387_s28 = smov [#allocation2]   ;;  %s45_s1 = sshll.u32 %s453_s3, 4  ;;  %s46_s1 = int_to_ptr.hbm [resolvable:$true] %s45_s1 }
   0x7   :  { %s19_s29 = sshll.u32 %s387_s28, 4  ;;  %s388_s0 = smov [#allocation7]   ;;  %s20_s29 = int_to_ptr.vmem [resolvable:$true] %s19_s29 }
   0x8   :  { %25 = dma.hbm_to_vmem [thread:$0]  %s18_s25, 1024, %s20_s29, [#allocation3], %s385_s26, %s385_s26, %s386_s27  }
   0x9   :  { %s47_s7 = sshll.u32 %s388_s0, 4  ;;  %s48_s7 = int_to_ptr.vmem [resolvable:$true] %s47_s7 }
   0xa   :  { %53 = dma.hbm_to_vmem [thread:$0]  %s46_s1, 2048, %s48_s7, [#allocation6], %s385_s26, %s385_s26, %s386_s27  }
   0xb   :  { %378 = dma.done.wait [#allocation3], 1024  }
   0xc   :  { %379 = vsyncadd [#allocation3], 4294966272 }
   0xd   :  { %380 = dma.done.wait [#allocation6], 4096  }
   0xe   :  { %381 = vsyncadd [#allocation6], 4294963200  ;;  %v91_v0 = vld [vmem:[#allocation5 + $0x78] sm:$0xff]  ;;  %v90_v1 = vld [vmem:[#allocation5 + $0x70] sm:$0xff]  ;;  %s228_s13 = sshll.u32 %s455_s5, 4  ;;  %s229_s13 = int_to_ptr.hbm [resolvable:$true] %s228_s13 }
   0xf   :  { %242 = vmatpush.msra.mxu2 %v91_v0  ;;  %96 = vmatpush.msra.mxu0 %v91_v0  ;;  %v89_v2 = vld [vmem:[#allocation5 + $0x68] sm:$0xff]  ;;  %v88_v3 = vld [vmem:[#allocation5 + $0x60] sm:$0xff]  ;;  %v87_v4 = vld [vmem:[#allocation5 + $0x58] sm:$0xff] }
  0x10   :  { %v86_v5 = vld [vmem:[#allocation5 + $0x50] sm:$0xff]  ;;  %v85_v6 = vld [vmem:[#allocation5 + $0x48] sm:$0xff]  ;;  %v84_v7 = vld [vmem:[#allocation5 + $0x40] sm:$0xff] }
  0x11   :  { %243 = vmatpush.msra.mxu2 %v90_v1  ;;  %97 = vmatpush.msra.mxu0 %v90_v1  ;;  %v83_v8 = vld [vmem:[#allocation5 + $0x38] sm:$0xff]  ;;  %v82_v9 = vld [vmem:[#allocation5 + $0x30] sm:$0xff]  ;;  %v81_v10 = vld [vmem:[#allocation5 + $0x28] sm:$0xff] }
  0x12   :  { %v80_v11 = vld [vmem:[#allocation5 + $0x20] sm:$0xff]  ;;  %v79_v12 = vld [vmem:[#allocation5 + $0x18] sm:$0xff]  ;;  %v78_v13 = vld [vmem:[#allocation5 + $0x10] sm:$0xff] }
  0x13   :  { %244 = vmatpush.msra.mxu2 %v89_v2  ;;  %98 = vmatpush.msra.mxu0 %v89_v2  ;;  %v160_v14 = vld [vmem:[#allocation7 + $0x78] sm:$0xff]  ;;  %v159_v15 = vld [vmem:[#allocation7 + $0x70] sm:$0xff]  ;;  %v77_v16 = vld [vmem:[#allocation5 + $0x8] sm:$0xff] }
  0x14   :  { %258 = vmatpush.msra.mxu3 %v160_v14  ;;  %165 = vmatpush.msra.mxu1 %v160_v14  ;;  %v158_v17 = vld [vmem:[#allocation7 + $0x68] sm:$0xff]  ;;  %v76_v18 = vld [vmem:[#allocation5] sm:$0xff]  ;;  %v156_v22 = vld [vmem:[#allocation7 + $0x58] sm:$0xff] }
  0x15   :  { %245 = vmatpush.msra.mxu2 %v88_v3  ;;  %99 = vmatpush.msra.mxu0 %v88_v3  ;;  %v72_v19 = vld [vmem:[#allocation2 + $0x20] sm:$0xff]  ;;  %v155_v23 = vld [vmem:[#allocation7 + $0x50] sm:$0xff]  ;;  %v154_v24 = vld [vmem:[#allocation7 + $0x48] sm:$0xff] }
  0x16   :  { %259 = vmatpush.msra.mxu3 %v159_v15  ;;  %166 = vmatpush.msra.mxu1 %v159_v15  ;;  %v68_v20 = vld [vmem:[#allocation2] sm:$0xff]  ;;  %v73_v25 = vld [vmem:[#allocation2 + $0x28] sm:$0xff]  ;;  %v152_v28 = vld [vmem:[#allocation7 + $0x38] sm:$0xff] }
  0x17   :  { %246 = vmatpush.msra.mxu2 %v87_v4  ;;  %100 = vmatpush.msra.mxu0 %v87_v4  ;;  %v157_v21 = vld [vmem:[#allocation7 + $0x60] sm:$0xff]  ;;  %v69_v26 = vld [vmem:[#allocation2 + $0x8] sm:$0xff]  ;;  %v151_v29 = vld [vmem:[#allocation7 + $0x30] sm:$0xff] }
  0x18   :  { %260 = vmatpush.msra.mxu3 %v158_v17  ;;  %167 = vmatpush.msra.mxu1 %v158_v17  ;;  %v153_v27 = vld [vmem:[#allocation7 + $0x40] sm:$0xff]  ;;  %v150_v30 = vld [vmem:[#allocation7 + $0x28] sm:$0xff]  ;;  %v74_v31 = vld [vmem:[#allocation2 + $0x30] sm:$0xff] }
  0x19   :  { %247 = vmatpush.msra.mxu2 %v86_v5  ;;  %101 = vmatpush.msra.mxu0 %v86_v5  ;;  %v70_v32 = vld [vmem:[#allocation2 + $0x10] sm:$0xff]  ;;  %v149_v33 = vld [vmem:[#allocation7 + $0x20] sm:$0xff]  ;;  %v148_v34 = vld [vmem:[#allocation7 + $0x18] sm:$0xff] }
  0x1a   :  { %261 = vmatpush.msra.mxu3 %v157_v21  ;;  %168 = vmatpush.msra.mxu1 %v157_v21  ;;  %v75_v35 = vld [vmem:[#allocation2 + $0x38] sm:$0xff]  ;;  %v147_v37 = vld [vmem:[#allocation7 + $0x10] sm:$0xff]  ;;  %v146_v38 = vld [vmem:[#allocation7 + $0x8] sm:$0xff] }
  0x1b   :  { %248 = vmatpush.msra.mxu2 %v85_v6  ;;  %102 = vmatpush.msra.mxu0 %v85_v6  ;;  %v71_v36 = vld [vmem:[#allocation2 + $0x18] sm:$0xff]  ;;  %v145_v39 = vld [vmem:[#allocation7] sm:$0xff] }
  0x1c   :  { %262 = vmatpush.msra.mxu3 %v156_v22  ;;  %169 = vmatpush.msra.mxu1 %v156_v22  ;;  %v280_v40 = vld [vmem:[%s452_s2] ss:$0 sm:$0xff] }
  0x1d   :  { %249 = vmatpush.msra.mxu2 %v84_v7  ;;  %103 = vmatpush.msra.mxu0 %v84_v7  ;;  %v281_v1 = vld [vmem:[%s454_s4] ss:$0 sm:$0xff]  ;;  %s389_s4 = smov [#allocation8]  }
  0x1e   :  { %263 = vmatpush.msra.mxu3 %v155_v23  ;;  %170 = vmatpush.msra.mxu1 %v155_v23  ;;  %s226_s10 = sshll.u32 %s389_s4, 4  ;;  %s227_s10 = int_to_ptr.vmem [resolvable:$true] %s226_s10 }
  0x1f   :  { %250 = vmatpush.msra.mxu2 %v83_v8  ;;  %104 = vmatpush.msra.mxu0 %v83_v8 }
  0x20   :  { %264 = vmatpush.msra.mxu3 %v154_v24  ;;  %171 = vmatpush.msra.mxu1 %v154_v24 }
  0x21   :  { %251 = vmatpush.msra.mxu2 %v82_v9  ;;  %105 = vmatpush.msra.mxu0 %v82_v9 }
  0x22   :  { %265 = vmatpush.msra.mxu3 %v153_v27  ;;  %172 = vmatpush.msra.mxu1 %v153_v27 }
  0x23   :  { %252 = vmatpush.msra.mxu2 %v81_v10  ;;  %106 = vmatpush.msra.mxu0 %v81_v10 }
  0x24   :  { %266 = vmatpush.msra.mxu3 %v152_v28  ;;  %173 = vmatpush.msra.mxu1 %v152_v28 }
  0x25   :  { %253 = vmatpush.msra.mxu2 %v80_v11  ;;  %107 = vmatpush.msra.mxu0 %v80_v11 }
  0x26   :  { %267 = vmatpush.msra.mxu3 %v151_v29  ;;  %174 = vmatpush.msra.mxu1 %v151_v29 }
  0x27   :  { %254 = vmatpush.msra.mxu2 %v79_v12  ;;  %108 = vmatpush.msra.mxu0 %v79_v12 }
  0x28   :  { %268 = vmatpush.msra.mxu3 %v150_v30  ;;  %175 = vmatpush.msra.mxu1 %v150_v30 }
  0x29   :  { %255 = vmatpush.msra.mxu2 %v78_v13  ;;  %109 = vmatpush.msra.mxu0 %v78_v13 }
  0x2a   :  { %269 = vmatpush.msra.mxu3 %v149_v33  ;;  %176 = vmatpush.msra.mxu1 %v149_v33 }
  0x2b   :  { %256 = vmatpush.msra.mxu2 %v77_v16  ;;  %110 = vmatpush.msra.mxu0 %v77_v16 }
  0x2c   :  { %270 = vmatpush.msra.mxu3 %v148_v34  ;;  %177 = vmatpush.msra.mxu1 %v148_v34 }
  0x2d   :  { %257 = vmatpush.msra.mxu2 %v76_v18  ;;  %111 = vmatpush.msra.mxu0 %v76_v18 }
  0x2e   :  { %124 = vmatmul.f32.vlgmr.msra.gmra.mxu2 %v72_v19  ;;  %112 = vmatmul.f32.vlgmr.msra.gmra.mxu0 %v68_v20 }
  0x2f   :  { %271 = vmatpush.msra.mxu3 %v147_v37  ;;  %178 = vmatpush.msra.mxu1 %v147_v37 }
  0x31   :  { %272 = vmatpush.msra.mxu3 %v146_v38  ;;  %179 = vmatpush.msra.mxu1 %v146_v38 }
  0x33   :  { %273 = vmatpush.msra.mxu3 %v145_v39  ;;  %180 = vmatpush.msra.mxu1 %v145_v39 }
  0x36   :  { %127 = vmatmul.f32.gmra.mxu2 %v73_v25  ;;  %115 = vmatmul.f32.gmra.mxu0 %v69_v26 }
  0x3e   :  { %130 = vmatmul.f32.gmra.mxu2 %v74_v31  ;;  %118 = vmatmul.f32.gmra.mxu0 %v70_v32 }
  0x46   :  { %133 = vmatmul.f32.gmra.mxu2 %v75_v35  ;;  %121 = vmatmul.f32.gmra.mxu0 %v71_v36 }
  0xab   :  { %v113_v41 = vpop.f32.mrf.mxu0 }
  0xac   :  { %v114_v42 = vadd.f32 %v280_v40, %v113_v41 }
  0xae   :  { %v137_v43 = vmax.f32 %v114_v42, 0.0 }
  0xb0   :  { %181 = vmatmul.f32.vlgmr.msra.gmra.mxu1 %v137_v43 }
  0xb1   :  { %v125_v44 = vpop.f32.mrf.mxu2 }
  0xb2   :  { %v126_v45 = vadd.f32 %v280_v40, %v125_v44 }
  0xb3   :  { %v116_v46 = vpop.f32.mrf.mxu0 }
  0xb4   :  { %v141_v47 = vmax.f32 %v126_v45, 0.0  ;;  %v117_v48 = vadd.f32 %v280_v40, %v116_v46 }
  0xb6   :  { %193 = vmatmul.f32.vlgmr.msra.gmra.mxu3 %v141_v47  ;;  %v138_v49 = vmax.f32 %v117_v48, 0.0 }
  0xb8   :  { %184 = vmatmul.f32.gmra.mxu1 %v138_v49 }
  0xb9   :  { %v128_v50 = vpop.f32.mrf.mxu2 }
  0xba   :  { %v129_v51 = vadd.f32 %v280_v40, %v128_v50 }
  0xbb   :  { %v119_v52 = vpop.f32.mrf.mxu0 }
  0xbc   :  { %v142_v53 = vmax.f32 %v129_v51, 0.0  ;;  %v120_v54 = vadd.f32 %v280_v40, %v119_v52 }
  0xbe   :  { %196 = vmatmul.f32.gmra.mxu3 %v142_v53  ;;  %v139_v55 = vmax.f32 %v120_v54, 0.0 }
  0xc0   :  { %187 = vmatmul.f32.gmra.mxu1 %v139_v55 }
  0xc1   :  { %v131_v56 = vpop.f32.mrf.mxu2 }
  0xc2   :  { %v132_v57 = vadd.f32 %v280_v40, %v131_v56 }
  0xc3   :  { %v122_v58 = vpop.f32.mrf.mxu0 }
  0xc4   :  { %v143_v59 = vmax.f32 %v132_v57, 0.0  ;;  %v123_v60 = vadd.f32 %v280_v40, %v122_v58 }
  0xc6   :  { %199 = vmatmul.f32.gmra.mxu3 %v143_v59  ;;  %v140_v61 = vmax.f32 %v123_v60, 0.0 }
  0xc8   :  { %190 = vmatmul.f32.gmra.mxu1 %v140_v61 }
  0xc9   :  { %v134_v62 = vpop.f32.mrf.mxu2 }
  0xca   :  { %v135_v63 = vadd.f32 %v280_v40, %v134_v62 }
  0xcc   :  { %v144_v0 = vmax.f32 %v135_v63, 0.0 }
  0xce   :  { %202 = vmatmul.f32.gmra.mxu3 %v144_v0 }
 0x12d   :  { %v182_v2 = vpop.f32.mrf.mxu1 }
 0x12e   :  { %v183_v3 = vadd.f32 %v281_v1, %v182_v2 }
 0x130   :  { %v206_v4 = vmax.f32 %v183_v3, 0.0 }
 0x132   :  { %214 = vst [vmem:[#allocation8] sm:$0xff] %v206_v4 }
 0x135   :  { %v185_v5 = vpop.f32.mrf.mxu1 }
 0x136   :  { %v186_v6 = vadd.f32 %v281_v1, %v185_v5 }
 0x138   :  { %v207_v7 = vmax.f32 %v186_v6, 0.0 }
 0x139   :  { %v194_v8 = vpop.f32.mrf.mxu3 }
 0x13a   :  { %v195_v9 = vadd.f32 %v281_v1, %v194_v8  ;;  %215 = vst [vmem:[#allocation8 + $0x8] sm:$0xff] %v207_v7 }
 0x13c   :  { %v210_v10 = vmax.f32 %v195_v9, 0.0 }
 0x13d   :  { %v188_v11 = vpop.f32.mrf.mxu1 }
 0x13e   :  { %218 = vst [vmem:[#allocation8 + $0x20] sm:$0xff] %v210_v10  ;;  %v189_v12 = vadd.f32 %v281_v1, %v188_v11 }
 0x140   :  { %v208_v13 = vmax.f32 %v189_v12, 0.0 }
 0x141   :  { %v197_v14 = vpop.f32.mrf.mxu3 }
 0x142   :  { %v198_v15 = vadd.f32 %v281_v1, %v197_v14  ;;  %216 = vst [vmem:[#allocation8 + $0x10] sm:$0xff] %v208_v13 }
 0x144   :  { %v211_v16 = vmax.f32 %v198_v15, 0.0 }
 0x145   :  { %v191_v17 = vpop.f32.mrf.mxu1 }
 0x146   :  { %219 = vst [vmem:[#allocation8 + $0x28] sm:$0xff] %v211_v16  ;;  %v192_v18 = vadd.f32 %v281_v1, %v191_v17 }
 0x148   :  { %v209_v19 = vmax.f32 %v192_v18, 0.0 }
 0x149   :  { %v200_v20 = vpop.f32.mrf.mxu3 }
 0x14a   :  { %v201_v21 = vadd.f32 %v281_v1, %v200_v20  ;;  %217 = vst [vmem:[#allocation8 + $0x18] sm:$0xff] %v209_v19 }
 0x14c   :  { %v212_v22 = vmax.f32 %v201_v21, 0.0 }
 0x14e   :  { %220 = vst [vmem:[#allocation8 + $0x30] sm:$0xff] %v212_v22 }
 0x151   :  { %v203_v23 = vpop.f32.mrf.mxu3 }
 0x152   :  { %v204_v24 = vadd.f32 %v281_v1, %v203_v23 }
 0x154   :  { %v213_v25 = vmax.f32 %v204_v24, 0.0 }
 0x156   :  { %221 = vst [vmem:[#allocation8 + $0x38] sm:$0xff] %v213_v25 }
 0x157   :  { %234 = dma.vmem_to_hbm [thread:$0]  %s227_s10, 1024, %s229_s13, [#allocation4], %s385_s26, %s385_s26, %s386_s27  }
 0x158   :  { %382 = dma.done.wait [#allocation4], 1024  }
 0x159   :  { %383 = vsyncadd [#allocation4], 4294966272 }
 0x15a   :  { %239 = vsyncpa [#allocation3], 1 }
 0x15b   :  { %240 = vsyncpa [#allocation6], 1 }
 0x15c   :  { %241 = vsyncpa [#allocation4], 1 }

</bundles_post_ra>
